<compile_context>
chip_gen: v7x
topology: tpu7x:2x2x1
jax: 0.10.0
libtpu: 0.0.40
codegen_flags: <defaults>
</compile_context>

<pallas_src>
import functools

import jax
import jax.numpy as jnp
from jax.experimental import pallas as pl
from jax.experimental.pallas import tpu as pltpu


def _ls_ce_kernel(target_ref, preds_ref, out_ref, *, n_valid, epsilon):
    """Fused per-sample label-smoothing CE for one batch tile.

    target_ref: (1, TILE_N) int32 lane-dense class indices
    preds_ref : (TILE_N, C) native dtype (bf16/f32) logits
    out_ref   : (1, TILE_N) f32 lane-dense fused per-sample loss
                  = lse - (eps/C)*sum_c p_c - (1-eps)*p_target
                Padded rows (index >= n_valid) are written as exact zeros.
    """
    p_nat = preds_ref[...]                                    # (T, C) native dtype
    tile_n, num_classes = p_nat.shape

    # Row max in the native width (cast is exact & monotone -> same max).
    m = jnp.max(p_nat, axis=-1, keepdims=True).astype(jnp.float32)   # (T, 1)
    p = p_nat.astype(jnp.float32)                                     # upcast once

    # Stable logsumexp and sum of logits (f32 accumulation).
    lse = jnp.log(jnp.sum(jnp.exp(p - m), axis=-1, keepdims=True)) + m   # (T, 1)
    sum_p = jnp.sum(p, axis=-1, keepdims=True)                           # (T, 1)

    # Target logit via one-hot select (no dynamic gather on TPU). Select in the
    # native width -- exact, since only one element per row is non-zero.
    tgt = target_ref[...].reshape(tile_n, 1)                             # (T, 1)
    col = jax.lax.broadcasted_iota(jnp.int32, (tile_n, num_classes), 1)  # (T, C)
    p_tgt = jnp.sum(jnp.where(col == tgt, p_nat, jnp.zeros_like(p_nat)),
                    axis=-1, keepdims=True).astype(jnp.float32)          # (T, 1)

    # Epsilon blend fused:
    #   eps*(C*lse - sum_p)/C + (1-eps)*(lse - p_tgt)
    # = lse - (eps/C)*sum_p - (1-eps)*p_tgt
    fused = lse - (epsilon / num_classes) * sum_p - (1.0 - epsilon) * p_tgt

    # Lane-dense store; zero padded remainder rows (garbage/NaN in them is
    # discarded by the select) so the wrapper can reduce without slicing.
    fused_row = fused.reshape(1, tile_n)
    row_idx = (pl.program_id(0) * tile_n
               + jax.lax.broadcasted_iota(jnp.int32, (1, tile_n), 1))
    out_ref[...] = jnp.where(row_idx < n_valid, fused_row, 0.0)


def _choose_tile_n(n_rows, num_classes, itemsize):
    """Pick a batch tile.

    - small batches (<=128): one full-extent tile (exact dims, no padding),
    - otherwise a multiple of 128 (lane-dense target/output blocks, bf16
      sublane packing), sized so 2x double-buffered native preds blocks plus
      ~4 f32-width in-kernel temporaries stay inside a 32 MiB live budget
      (vmem_limit is 48 MiB -> safe on v7x's 64 MiB physical VMEM, ample on
      v5e/v6e's 128 MiB) while keeping blocks in the multi-MiB range,
    - and >= 2 grid steps when the batch allows it, so v7x's two TensorCores
      both get work on the "parallel" grid axis.
    """
    if n_rows <= 128:
        return int(n_rows)
    per_row = num_classes * (2 * itemsize + 4 * 4) + 32
    budget = 32 * 1024 * 1024
    tile = (budget // per_row) // 128 * 128
    tile = max(128, min(tile, 4096))
    # TODO(synk): for vocab-scale C where even a 128-row tile overflows the
    # budget, switch to class-axis tiling with an online logsumexp.
    split = ((n_rows + 255) // 256) * 128   # ~ceil(n/2) rounded up to 128
    return int(min(tile, split))


@functools.partial(jax.jit, static_argnames=("epsilon", "reduction", "tile_n"))
def label_smoothing_cross_entropy(preds, target, epsilon=0.2, reduction="mean",
                                  tile_n=None):
    """Matches LabelSmoothingCrossEntropy(epsilon, reduction).forward(preds, target)."""
    n_rows, num_classes = preds.shape
    itemsize = jnp.dtype(preds.dtype).itemsize

    if tile_n is None:
        tile_n = _choose_tile_n(n_rows, num_classes, itemsize)
    elif tile_n >= n_rows:
        tile_n = n_rows                                    # single full-extent tile
    else:
        tile_n = max(128, ((tile_n + 127) // 128) * 128)   # lane-dense blocks need 128-multiples
    num_tiles = pl.cdiv(n_rows, tile_n)
    n_pad = num_tiles * tile_n

    target_row = target.astype(jnp.int32).reshape(1, n_rows)   # lane-dense targets

    cost = pl.CostEstimate(
        flops=8 * n_rows * num_classes,
        transcendentals=n_rows * (num_classes + 1),
        bytes_accessed=n_rows * (num_classes * itemsize + 4) + n_pad * 4,
    )

    per_sample = pl.pallas_call(
        functools.partial(_ls_ce_kernel, n_valid=n_rows, epsilon=float(epsilon)),
        grid=(num_tiles,),
        in_specs=[
            pl.BlockSpec((1, tile_n), lambda i: (0, i)),            # targets (lane-dense)
            pl.BlockSpec((tile_n, num_classes), lambda i: (i, 0)),  # logits, native-dtype DMA
        ],
        out_specs=pl.BlockSpec((1, tile_n), lambda i: (0, i)),      # lane-dense output
        out_shape=jax.ShapeDtypeStruct((1, n_pad), jnp.float32),
        compiler_params=pltpu.CompilerParams(
            dimension_semantics=("parallel",),    # independent tiles; v7x 2-TC sharding
            vmem_limit_bytes=48 * 1024 * 1024,    # <= v7x's 64 MiB physical VMEM
        ),
        cost_estimate=cost,
    )(target_row, preds)

    if reduction == "mean":
        return jnp.sum(per_sample) / n_rows       # padded entries are exact zeros
    if reduction == "sum":
        return jnp.sum(per_sample)
    return per_sample[0, :n_rows]                 # 'none': per-sample vector


def _reference(preds, target, epsilon=0.2, reduction="mean"):
    """Pure-JAX mirror of the PyTorch module."""
    num_classes = preds.shape[-1]
    logp = jax.nn.log_softmax(preds.astype(jnp.float32), axis=-1)
    loss_per = -jnp.sum(logp, axis=-1)
    nll_per = -jnp.take_along_axis(logp, target[:, None].astype(jnp.int32), axis=-1)[:, 0]
    if reduction == "mean":
        loss, nll = jnp.mean(loss_per), jnp.mean(nll_per)
    elif reduction == "sum":
        loss, nll = jnp.sum(loss_per), jnp.sum(nll_per)
    else:
        loss, nll = loss_per, nll_per
    return epsilon * (loss / num_classes) + (1.0 - epsilon) * nll


if __name__ == "__main__":
    key = jax.random.PRNGKey(0)

    # --- test 1: small shape matching the module's typical use (f32) ---------
    k1, k2, key = jax.random.split(key, 3)
    N, C = 8, 16
    preds = jax.random.normal(k1, (N, C), dtype=jnp.float32) * 2.0
    target = jax.random.randint(k2, (N,), 0, C, dtype=jnp.int32)

    out = label_smoothing_cross_entropy(preds, target, epsilon=0.2, reduction="mean")
    out = jax.block_until_ready(out)
    ref = _reference(preds, target, epsilon=0.2, reduction="mean")
    assert jnp.allclose(out, ref, atol=1e-5, rtol=1e-5), (out, ref)

    # --- test 2: multi-tile grid with a masked remainder tile (f32) -----------
    k1, k2, key = jax.random.split(key, 3)
    N2, C2 = 300, 32
    preds2 = jax.random.normal(k1, (N2, C2), dtype=jnp.float32)
    target2 = jax.random.randint(k2, (N2,), 0, C2, dtype=jnp.int32)
    for red in ("mean", "sum", "none"):
        out2 = jax.block_until_ready(
            label_smoothing_cross_entropy(preds2, target2, epsilon=0.2, reduction=red))
        ref2 = _reference(preds2, target2, epsilon=0.2, reduction=red)
        assert jnp.allclose(out2, ref2, atol=1e-4, rtol=1e-5), (red, out2, ref2)
    # explicit tile override (3 tiles, 128 rows each)
    out2b = jax.block_until_ready(
        label_smoothing_cross_entropy(preds2, target2, epsilon=0.2,
                                      reduction="none", tile_n=128))
    ref2b = _reference(preds2, target2, epsilon=0.2, reduction="none")
    assert jnp.allclose(out2b, ref2b, atol=1e-4, rtol=1e-5)

    # --- test 3: native bf16 DMA with in-kernel f32 upcast --------------------
    k1, k2, key = jax.random.split(key, 3)
    N3, C3 = 64, 128
    preds3 = (jax.random.normal(k1, (N3, C3), dtype=jnp.float32)).astype(jnp.bfloat16)
    target3 = jax.random.randint(k2, (N3,), 0, C3, dtype=jnp.int32)
    out3 = jax.block_until_ready(
        label_smoothing_cross_entropy(preds3, target3, epsilon=0.2, reduction="mean"))
    ref3 = _reference(preds3, target3, epsilon=0.2, reduction="mean")
    assert jnp.allclose(out3, ref3, atol=1e-3, rtol=1e-3), (out3, ref3)

    print("KERNEL_OK")
</pallas_src>

<mosaic_0001>
module attributes {stable_mosaic.version = 11 : i64} {
  func.func @_ls_ce_kernel(%arg0: i32, %arg1: memref<1x8xi32, #tpu.memory_space<vmem>>, %arg2: memref<8x16xf32, #tpu.memory_space<vmem>>, %arg3: memref<1x8xf32, #tpu.memory_space<vmem>>) attributes {dimension_semantics = [#tpu.dimension_semantics<parallel>], iteration_bounds = array<i64: 1>, scalar_prefetch = 0 : i64, scratch_operands = 0 : i64, tpu.core_type = #tpu.core_type<tc>, window_params = [{transform_indices = @transform_0, window_bounds = array<i64: 1, 8>}, {transform_indices = @transform_1, window_bounds = array<i64: 8, 16>}, {transform_indices = @transform_2, window_bounds = array<i64: 1, 8>}]} {
    %c0 = arith.constant 0 : index
    %c0_0 = arith.constant 0 : index
    %0 = vector.load %arg2[%c0, %c0_0] : memref<8x16xf32, #tpu.memory_space<vmem>>, vector<8x16xf32>
    %cst = arith.constant dense<0xFF800000> : vector<8xf32>
    %1 = vector.multi_reduction <maximumf>, %0, %cst [1] : vector<8x16xf32> to vector<8xf32>
    %2 = vector.shape_cast %1 : vector<8xf32> to vector<8x1xf32>
    %3 = vector.broadcast %2 : vector<8x1xf32> to vector<8x16xf32>
    %4 = arith.subf %0, %3 : vector<8x16xf32>
    %5 = math.exp %4 : vector<8x16xf32>
    %cst_1 = arith.constant dense<0.000000e+00> : vector<8xf32>
    %6 = vector.multi_reduction <add>, %5, %cst_1 [1] : vector<8x16xf32> to vector<8xf32>
    %7 = vector.shape_cast %6 : vector<8xf32> to vector<8x1xf32>
    %8 = math.log %7 : vector<8x1xf32>
    %9 = arith.addf %8, %2 : vector<8x1xf32>
    %cst_2 = arith.constant dense<0.000000e+00> : vector<8xf32>
    %10 = vector.multi_reduction <add>, %0, %cst_2 [1] : vector<8x16xf32> to vector<8xf32>
    %11 = vector.shape_cast %10 : vector<8xf32> to vector<8x1xf32>
    %c0_3 = arith.constant 0 : index
    %c0_4 = arith.constant 0 : index
    %12 = vector.load %arg1[%c0_3, %c0_4] : memref<1x8xi32, #tpu.memory_space<vmem>>, vector<1x8xi32>
    %13 = vector.shape_cast %12 : vector<1x8xi32> to vector<8x1xi32>
    %14 = tpu.iota {dimensions = array<i32: 1>} : vector<8x16xi32>
    %15 = vector.broadcast %13 : vector<8x1xi32> to vector<8x16xi32>
    %16 = arith.cmpi eq, %14, %15 : vector<8x16xi32>
    %cst_5 = arith.constant 0.000000e+00 : f32
    %17 = vector.broadcast %cst_5 : f32 to vector<8x16xf32>
    %18 = arith.select %16, %0, %17 : vector<8x16xi1>, vector<8x16xf32>
    %cst_6 = arith.constant dense<0.000000e+00> : vector<8xf32>
    %19 = vector.multi_reduction <add>, %18, %cst_6 [1] : vector<8x16xf32> to vector<8xf32>
    %20 = vector.shape_cast %19 : vector<8xf32> to vector<8x1xf32>
    %cst_7 = arith.constant 1.250000e-02 : f32
    %21 = vector.broadcast %cst_7 : f32 to vector<8x1xf32>
    %22 = arith.mulf %21, %11 : vector<8x1xf32>
    %23 = arith.subf %9, %22 : vector<8x1xf32>
    %cst_8 = arith.constant 8.000000e-01 : f32
    %24 = vector.broadcast %cst_8 : f32 to vector<8x1xf32>
    %25 = arith.mulf %24, %20 : vector<8x1xf32>
    %26 = arith.subf %23, %25 : vector<8x1xf32>
    %27 = vector.shape_cast %26 : vector<8x1xf32> to vector<1x8xf32>
    %c8_i32 = arith.constant 8 : i32
    %28 = arith.muli %arg0, %c8_i32 : i32
    %29 = tpu.iota {dimensions = array<i32: 1>} : vector<1x8xi32>
    %30 = vector.broadcast %28 : i32 to vector<1x8xi32>
    %31 = arith.addi %30, %29 : vector<1x8xi32>
    %c8_i32_9 = arith.constant 8 : i32
    %32 = vector.broadcast %c8_i32_9 : i32 to vector<1x8xi32>
    %33 = arith.cmpi slt, %31, %32 : vector<1x8xi32>
    %cst_10 = arith.constant 0.000000e+00 : f32
    %34 = vector.broadcast %cst_10 : f32 to vector<1x8xf32>
    %35 = arith.select %33, %27, %34 : vector<1x8xi1>, vector<1x8xf32>
    %c0_11 = arith.constant 0 : index
    %c0_12 = arith.constant 0 : index
    %36 = vector.load %arg3[%c0_11, %c0_12] : memref<1x8xf32, #tpu.memory_space<vmem>>, vector<1x8xf32>
    tpu.vector_store %arg3[%c0_11, %c0_12], %35 {strides = array<i32>} : memref<1x8xf32, #tpu.memory_space<vmem>>, vector<1x8xf32>,
    return
  }
  func.func @transform_0(%arg0: i32) -> (i32, i32) {
    %c0_i32 = arith.constant 0 : i32
    %c0_i32_0 = arith.constant 0 : i32
    return %c0_i32, %arg0 : i32, i32
  }
  func.func @transform_1(%arg0: i32) -> (i32, i32) {
    %c0_i32 = arith.constant 0 : i32
    %c0_i32_0 = arith.constant 0 : i32
    return %arg0, %c0_i32 : i32, i32
  }
  func.func @transform_2(%arg0: i32) -> (i32, i32) {
    %c0_i32 = arith.constant 0 : i32
    %c0_i32_0 = arith.constant 0 : i32
    return %c0_i32, %arg0 : i32, i32
  }
}

</mosaic_0001>

<bundles_post_ra>
// kernel: label_smoothing_cross_entropy.1
= control target key start
LH: loop header
LB: loop body
LE: loop exit
PB: predicated region body
PF: predicated region fallthrough
CT: control target
= control target key end

     0   :  { %7 = vsyncpa [#allocation3], 0  ;;  %s107_s9 = smov [#allocation2]   ;;  %s145_s0 = inlined_call_operand.vmem [shape: s32[1,8], index: 0, kind: input, shape index: {}]   ;;  %s146_s1 = inlined_call_operand.hbm [shape: f32[8,16], index: 1, kind: input, shape index: {}]   ;;  %s147_s2 = inlined_call_operand.vmem [shape: f32[1,8], index: 2, kind: output, shape index: {}]  }
   0x1   :  { %s16_s10 = sshll.u32 %s107_s9, 4  ;;  %s83_s13 = scalar_lea.hbm %s146_s1, 128  ;;  %s17_s10 = int_to_ptr.vmem [resolvable:$true] %s16_s10 }
   0x2   :  { %p84_p0 = scmp.ne.s32.totalorder %s146_s1, %s83_s13  ;;  %p87_p1 = scmp.lt.u32.totalorder %s83_s13, %s146_s1 }
   0x4   :  { %p89_p2 = pnand %p87_p1, %p84_p0 }
   0x6   :  { %92 = shalt.err (!%p89_p2)
}
   0x7   :  { %s93_s18 = scalar_lea.vmem %s17_s10, 128  ;;  %p98_p4 = scmp.lt.s32.totalorder %s17_s10, %s17_s10 }
   0x8   :  { %p94_p3 = scmp.ne.s32.totalorder %s17_s10, %s93_s18  ;;  %p99_p5 = scmp.lt.s32.totalorder %s93_s18, %s93_s18 }
   0xa   :  { %p100_p6 = por %p99_p5, %p98_p4 }
   0xc   :  { %p101_p7 = pnand %p100_p6, %p94_p3 }
   0xe   :  { %104 = shalt.err (!%p101_p7)
}
   0xf   :  { %19 = dma.hbm_to_vmem [thread:$0]  %s146_s1, 128, %s17_s10, [#allocation3]  }
  0x10   :  { %105 = dma.done.wait [#allocation3], 128  }
  0x11   :  { %106 = vsyncadd [#allocation3], 4294967168  ;;  %vm24_vm0 = vcmask 130048   ;;  %v23_v0 = vld [vmem:[#allocation2] sm:$0xff]  ;;  %v48_v6 = vlaneseq  ;;  %vm70_vm3 = vcmask 57344  }
  0x12   :  { %v25_v1 = vsel %vm24_vm0, %v23_v0, -inf  ;;  %v77_v2 = vld [vmem:[%s145_s0] ss:$0 sm:$0xff]  ;;  %v37_v11 = vsel %vm24_vm0, %v23_v0, 0.0 }
  0x13   :  { %26 = vmax.xlane.f32.xlu0 %v25_v1  ;;  %v49_v7 = vand.u32 127, %v48_v6  ;;  %v65_v19 = vshrl.u32 %v48_v6, 7 }
  0x15   :  { %v66_v24 = vsub.s32 %v49_v7, %v65_v19  ;;  %vm62_vm2 = vcmp.lt.s32.totalorder %v49_v7, 8 }
  0x29   :  { %46 = vbcast.lane.b32.xlu0 %v77_v2, 256 }
  0xa0   :  { %v27_v3 = vpop.xlane.xlu0 %26 }
  0xa1   :  { %v28_v4 = vsub.f32 %v23_v0, %v27_v3 }
  0xa3   :  { %v29_v5 = vmul.f32 1.442695, %v28_v4 }
  0xa4   :  { %v47_v8 = vpop.permute.xlu0 %46 }
  0xa5   :  { %79 = vpow2.f32 %v29_v5  ;;  %vm50_vm1 = vcmp.eq.s32.totalorder %v49_v7, %v47_v8 }
  0xa6   :  { %v51_v12 = vsel %vm50_vm1, %v23_v0, 0.0 }
  0xa7   :  { %v52_v13 = vsel %vm24_vm0, %v51_v12, 0.0 }
  0xaf   :  { %v80_v9 = vpop.eup %79 }
  0xb0   :  { %v31_v10 = vsel %vm24_vm0, %v80_v9, 0.0 }
  0xb1   :  { %32 = vadd.xlane.f32.xlu1 %v31_v10 }
  0xb5   :  { %38 = vadd.xlane.f32.xlu1 %v37_v11 }
  0xb9   :  { %53 = vadd.xlane.f32.xlu1 %v52_v13 }
 0x13e   :  { %v33_v14 = vpop.xlane.xlu1 %32 }
 0x13f   :  { %81 = vlog2.f32 %v33_v14 }
 0x142   :  { %v39_v15 = vpop.xlane.xlu1 %38 }
 0x143   :  { %v55_v21 = vmul.f32 0.0125, %v39_v15 }
 0x146   :  { %v54_v17 = vpop.xlane.xlu1 %53 }
 0x147   :  { %v57_v22 = vmul.f32 0.8, %v54_v17 }
 0x149   :  { %v82_v16 = vpop.eup %81 }
 0x14a   :  { %v35_v18 = vmul.f32 0.6931472, %v82_v16 }
 0x14c   :  { %v36_v20 = vadd.f32 %v35_v18, %v27_v3 }
 0x14e   :  { %v56_v23 = vsub.f32 %v36_v20, %v55_v21 }
 0x150   :  { %v58_v25 = vsub.f32 %v56_v23, %v57_v22 }
 0x152   :  { %v67_v26 = vrot.slane %v58_v25, %v66_v24 }
 0x154   :  { %v69_v27 = vsel %vm62_vm2, %v67_v26, 0.0 }
 0x155   :  { %71 = vst.msk [vmem:[%s147_s2] sm:$0x1] %vm70_vm3, %v69_v27 }
 0x156   :  { %76 = vsyncpa [#allocation3], 1 }

</bundles_post_ra>
